<compile_context>
chip_gen: v7x
topology: tpu7x:2x2x1
jax: 0.10.0
libtpu: 0.0.40
codegen_flags: <defaults>
</compile_context>

<pallas_src>
import functools

import jax
import jax.numpy as jnp
from jax import lax
from jax.experimental import pallas as pl
from jax.experimental.pallas import tpu as pltpu


def _pick_co_tile(c_out: int, n_batch: int, hw_pad: int) -> int:
    """Channel tile: prefer 256/128 for the 256-wide MXUs, shrink for v7x."""
    tco = c_out
    for t in (256, 128, 64, 32, 16, 8):
        if c_out % t == 0:
            tco = t
            break

    def _can_halve(t):
        h = t // 2
        return (t % 2 == 0) and h >= 8 and (h % 8 == 0) and (c_out % h == 0)

    # v7x: make sure both TensorCores get at least one "parallel" block.
    while n_batch * (c_out // tco) < 2 and _can_halve(tco):
        tco //= 2
    # Keep the VMEM-resident f32 output block (double-buffered) under ~16 MiB.
    while tco * hw_pad * 4 * 2 > (16 << 20) and _can_halve(tco):
        tco //= 2
    return tco


def _cbna_kernel(cols_ref, w_ref, gamma_ref, beta_ref, out_ref,
                 sum_ref, ssq_ref, *, eps, act, hw_valid, n_hw):
    # cols_ref:  (KKC, THW)        bf16 im2col tile (spatial tile of one image)
    # w_ref:     (TCo, KKC)        bf16 conv weights for this channel tile
    # gamma/beta:(TCo, 1)          f32 GroupNorm affine params
    # out_ref:   (n_hw, TCo, THW)  f32, VMEM-resident across the spatial axis
    # sum/ssq:   (TCo, 1)          f32 running per-channel stats
    hw_i = pl.program_id(2)

    @pl.when(hw_i == 0)
    def _init():
        sum_ref[...] = jnp.zeros_like(sum_ref)
        ssq_ref[...] = jnp.zeros_like(ssq_ref)

    # Convolution tile: bf16 x bf16 -> f32 accumulation on the MXU.
    y = jnp.dot(w_ref[...], cols_ref[...], preferred_element_type=jnp.float32)

    # Per-channel partial stats over this spatial tile.  The zero-padded tail
    # of the last tile contributes exactly 0 to both sums, so dividing by the
    # true element count later is exact.
    sum_ref[...] += jnp.sum(y, axis=1, keepdims=True)
    ssq_ref[...] += jnp.sum(y * y, axis=1, keepdims=True)

    # Stash the unnormalized conv tile in the resident output block
    # (lane-dense (TCo, THW) store at a dynamic leading-dim index).
    out_ref[hw_i] = y

    # Last spatial tile of this (n, channel-tile): normalize + activate.
    @pl.when(hw_i == n_hw - 1)
    def _finalize():
        inv_hw = 1.0 / float(hw_valid)
        mean = sum_ref[...] * inv_hw                              # (TCo, 1)
        var = jnp.maximum(ssq_ref[...] * inv_hw - mean * mean, 0.0)
        scale = lax.rsqrt(var + eps) * gamma_ref[...]             # (TCo, 1)
        shift = beta_ref[...] - mean * scale                      # (TCo, 1)
        for j in range(n_hw):  # static unroll over resident sub-tiles
            o = out_ref[j] * scale + shift                        # 2 VPU ops/elt
            if act == "relu":
                o = jnp.maximum(o, 0.0)
            elif act == "leakyrelu":
                o = jnp.where(o >= 0.0, o, 0.01 * o)
            else:  # "elu"
                o = jnp.where(o >= 0.0, o, jnp.exp(o) - 1.0)
            out_ref[j] = o


def conv_bn_act(
    x: jax.Array,
    weight: jax.Array,
    gamma: jax.Array,
    beta: jax.Array,
    *,
    stride: int = 1,
    dilation: int = 1,
    eps: float = 1e-5,
    activation: str = "ReLU",
    hw_tile: int = 2048,
) -> jax.Array:
    """Pallas ConvBatchNormAct.forward (non-transposed, with_bn=True)."""
    N, C_in, H, W = x.shape
    C_out, C_in_w, KH, KW = weight.shape
    assert C_in_w == C_in and KH == KW
    K = KH
    act = activation.lower()
    assert act in ("relu", "leakyrelu", "elu"), f"Activation {activation} not implemented"

    # --- PaddedConv2d: reflect padding ---
    pd = (K // 2) * dilation
    assert pd < H and pd < W, "reflect padding requires (K//2)*dilation < H, W"
    xp = jnp.pad(x, ((0, 0), (0, 0), (pd, pd), (pd, pd)), mode="reflect")
    Hp, Wp = H + 2 * pd, W + 2 * pd
    H_out = (Hp - dilation * (K - 1) - 1) // stride + 1
    W_out = (Wp - dilation * (K - 1) - 1) // stride + 1
    HW = H_out * W_out
    KKC = K * K * C_in

    # --- spatial tiling (lane-dense, 128-multiple tiles, padded last tile) ---
    target = max(128, int(hw_tile))
    n_hw = max(1, pl.cdiv(HW, target))
    if n_hw == 1:
        THW = HW
    else:
        THW = pl.cdiv(pl.cdiv(HW, n_hw), 128) * 128
    HWpad = n_hw * THW

    # --- im2col in the wrapper (static slices / XLA), cast to bf16 ---
    patches = []
    for kh in range(K):
        for kw in range(K):
            h0, w0 = kh * dilation, kw * dilation
            p = xp[:, :,
                   h0:h0 + stride * (H_out - 1) + 1:stride,
                   w0:w0 + stride * (W_out - 1) + 1:stride]  # (N, C_in, H_out, W_out)
            patches.append(p)
    cols = jnp.stack(patches, axis=1).reshape(N, KKC, HW)
    if HWpad != HW:
        cols = jnp.pad(cols, ((0, 0), (0, 0), (0, HWpad - HW)))
    cols = cols.astype(jnp.bfloat16)

    # Weight laid out to match the im2col row order, bf16.
    w2d = jnp.transpose(weight, (0, 2, 3, 1)).reshape(C_out, KKC).astype(jnp.bfloat16)
    gamma2d = gamma.reshape(C_out, 1).astype(jnp.float32)
    beta2d = beta.reshape(C_out, 1).astype(jnp.float32)

    TCo = _pick_co_tile(C_out, N, HWpad)
    grid = (N, C_out // TCo, n_hw)

    kernel = functools.partial(
        _cbna_kernel, eps=float(eps), act=act, hw_valid=HW, n_hw=n_hw)

    out4 = pl.pallas_call(
        kernel,
        out_shape=jax.ShapeDtypeStruct((N, n_hw, C_out, THW), jnp.float32),
        grid_spec=pltpu.PrefetchScalarGridSpec(
            num_scalar_prefetch=0,
            grid=grid,
            in_specs=[
                # squeezed batch dim: kernel sees (KKC, THW)
                pl.BlockSpec((None, KKC, THW), lambda n, c, s: (n, 0, s)),
                pl.BlockSpec((TCo, KKC), lambda n, c, s: (c, 0)),
                pl.BlockSpec((TCo, 1), lambda n, c, s: (c, 0)),
                pl.BlockSpec((TCo, 1), lambda n, c, s: (c, 0)),
            ],
            # constant index over the spatial axis -> VMEM-resident accumulator
            out_specs=pl.BlockSpec((None, n_hw, TCo, THW),
                                   lambda n, c, s: (n, 0, c, 0)),
            scratch_shapes=[
                pltpu.VMEM((TCo, 1), jnp.float32),   # running sum
                pltpu.VMEM((TCo, 1), jnp.float32),   # running sum of squares
            ],
        ),
        compiler_params=pltpu.CompilerParams(
            dimension_semantics=("parallel", "parallel", "arbitrary"),
            vmem_limit_bytes=48 * 1024 * 1024,
        ),
        cost_estimate=pl.CostEstimate(
            flops=2 * N * C_out * KKC * HWpad,
            transcendentals=N * C_out,
            bytes_accessed=(2 * N * KKC * HWpad + 2 * C_out * KKC
                            + 4 * N * C_out * HWpad + 8 * C_out),
        ),
    )(cols, w2d, gamma2d, beta2d)

    # (N, n_hw, C_out, THW) -> (N, C_out, HW) -> (N, C_out, H_out, W_out)
    out = jnp.transpose(out4, (0, 2, 1, 3)).reshape(N, C_out, HWpad)[:, :, :HW]
    return out.reshape(N, C_out, H_out, W_out)


def _reference(x, weight, gamma, beta, *, stride=1, dilation=1, eps=1e-5,
               activation="ReLU"):
    """Pure-JAX f32 reference: reflect-pad conv -> GroupNorm(C_out) -> act."""
    K = weight.shape[2]
    pd = (K // 2) * dilation
    xp = jnp.pad(x, ((0, 0), (0, 0), (pd, pd), (pd, pd)), mode="reflect")
    y = lax.conv_general_dilated(
        xp, weight, window_strides=(stride, stride), padding="VALID",
        rhs_dilation=(dilation, dilation),
        dimension_numbers=("NCHW", "OIHW", "NCHW"),
        precision=lax.Precision.HIGHEST)
    mean = jnp.mean(y, axis=(2, 3), keepdims=True)
    var = jnp.var(y, axis=(2, 3), keepdims=True)
    y = (y - mean) * lax.rsqrt(var + eps)
    y = y * gamma.reshape(1, -1, 1, 1) + beta.reshape(1, -1, 1, 1)
    act = activation.lower()
    if act == "relu":
        return jnp.maximum(y, 0.0)
    if act == "leakyrelu":
        return jnp.where(y >= 0.0, y, 0.01 * y)
    if act == "elu":
        return jnp.where(y >= 0.0, y, jnp.exp(y) - 1.0)
    raise NotImplementedError(act)


if __name__ == "__main__":
    key = jax.random.PRNGKey(0)
    k1, k2, k3, k4 = jax.random.split(key, 4)

    N, C_in, C_out, H, W, K = 2, 4, 8, 16, 16, 3

    x = jax.random.normal(k1, (N, C_in, H, W), dtype=jnp.float32)
    weight = 0.1 * jax.random.normal(k2, (C_out, C_in, K, K), dtype=jnp.float32)
    gamma = 1.0 + 0.1 * jax.random.normal(k3, (C_out,), dtype=jnp.float32)
    beta = 0.1 * jax.random.normal(k4, (C_out,), dtype=jnp.float32)

    ref = _reference(x, weight, gamma, beta, stride=1, dilation=1, activation="ReLU")

    # 1) default path (single spatial tile for this small feature map)
    out = conv_bn_act(x, weight, gamma, beta, stride=1, dilation=1,
                      activation="ReLU")
    out = jax.block_until_ready(out)
    assert out.shape == (N, C_out, H, W)
    # bf16 matmul with f32 accumulation vs. f32 reference: GroupNorm absorbs
    # most of the quantization, residual elementwise error is ~1e-2.
    err1 = float(jnp.max(jnp.abs(out - ref)))
    assert jnp.allclose(out, ref, atol=3e-2, rtol=3e-2), err1

    # 2) explicitly exercise the spatially-tiled path (2 tiles of 128 lanes)
    out_t = conv_bn_act(x, weight, gamma, beta, stride=1, dilation=1,
                        activation="ReLU", hw_tile=128)
    out_t = jax.block_until_ready(out_t)
    err2 = float(jnp.max(jnp.abs(out_t - ref)))
    assert jnp.allclose(out_t, ref, atol=3e-2, rtol=3e-2), err2

    print("KERNEL_OK")
</pallas_src>

<mosaic_0001>
module attributes {stable_mosaic.version = 11 : i64} {
  func.func @_cbna_kernel(%arg0: i32, %arg1: i32, %arg2: i32, %arg3: memref<1x36x256xbf16, #tpu.memory_space<vmem>>, %arg4: memref<8x36xbf16, #tpu.memory_space<vmem>>, %arg5: memref<8x1xf32, #tpu.memory_space<vmem>>, %arg6: memref<8x1xf32, #tpu.memory_space<vmem>>, %arg7: memref<1x1x8x256xf32, #tpu.memory_space<vmem>>, %arg8: memref<8x1xf32, #tpu.memory_space<vmem>>, %arg9: memref<8x1xf32, #tpu.memory_space<vmem>>) attributes {dimension_semantics = [#tpu.dimension_semantics<parallel>, #tpu.dimension_semantics<parallel>, #tpu.dimension_semantics<arbitrary>], iteration_bounds = array<i64: 2, 1, 1>, scalar_prefetch = 0 : i64, scratch_operands = 2 : i64, tpu.core_type = #tpu.core_type<tc>, window_params = [{transform_indices = @transform_0, window_bounds = array<i64: 1, 36, 256>}, {transform_indices = @transform_1, window_bounds = array<i64: 8, 36>}, {transform_indices = @transform_2, window_bounds = array<i64: 8, 1>}, {transform_indices = @transform_3, window_bounds = array<i64: 8, 1>}, {transform_indices = @transform_4, window_bounds = array<i64: 1, 1, 8, 256>}]} {
    %c0_i32 = arith.constant 0 : i32
    %0 = arith.cmpi eq, %arg2, %c0_i32 : i32
    %1 = arith.extui %0 : i1 to i32
    %c0_i32_0 = arith.constant 0 : i32
    %2 = arith.cmpi ne, %1, %c0_i32_0 : i32
    scf.if %2 {
      %cst_20 = arith.constant 0.000000e+00 : f32
      %25 = vector.broadcast %cst_20 : f32 to vector<8x1xf32>
      %c0_21 = arith.constant 0 : index
      %c0_22 = arith.constant 0 : index
      %26 = vector.load %arg8[%c0_21, %c0_22] : memref<8x1xf32, #tpu.memory_space<vmem>>, vector<8x1xf32>
      tpu.vector_store %arg8[%c0_21, %c0_22], %25 {strides = array<i32>} : memref<8x1xf32, #tpu.memory_space<vmem>>, vector<8x1xf32>,
      %cst_23 = arith.constant 0.000000e+00 : f32
      %27 = vector.broadcast %cst_23 : f32 to vector<8x1xf32>
      %c0_24 = arith.constant 0 : index
      %c0_25 = arith.constant 0 : index
      %28 = vector.load %arg9[%c0_24, %c0_25] : memref<8x1xf32, #tpu.memory_space<vmem>>, vector<8x1xf32>
      tpu.vector_store %arg9[%c0_24, %c0_25], %27 {strides = array<i32>} : memref<8x1xf32, #tpu.memory_space<vmem>>, vector<8x1xf32>,
    } else {
    }
    %c0 = arith.constant 0 : index
    %c0_1 = arith.constant 0 : index
    %3 = vector.load %arg4[%c0, %c0_1] : memref<8x36xbf16, #tpu.memory_space<vmem>>, vector<8x36xbf16>
    %c0_2 = arith.constant 0 : index
    %c0_3 = arith.constant 0 : index
    %c0_4 = arith.constant 0 : index
    %4 = vector.load %arg3[%c0_2, %c0_3, %c0_4] : memref<1x36x256xbf16, #tpu.memory_space<vmem>>, vector<1x36x256xbf16>
    %5 = vector.shape_cast %4 : vector<1x36x256xbf16> to vector<36x256xbf16>
    %cst = arith.constant dense<0.000000e+00> : vector<8x256xf32>
    %6 = tpu.matmul %3, %5, %cst {dimension_numbers = #tpu.dot_dimension_numbers<[1], [0], [0], [1], [0, 0, 1, 1], [], []>} : vector<8x36xbf16>, vector<36x256xbf16>, vector<8x256xf32> -> vector<8x256xf32>
    %c0_5 = arith.constant 0 : index
    %c0_6 = arith.constant 0 : index
    %7 = vector.load %arg8[%c0_5, %c0_6] : memref<8x1xf32, #tpu.memory_space<vmem>>, vector<8x1xf32>
    %cst_7 = arith.constant dense<0.000000e+00> : vector<8xf32>
    %8 = vector.multi_reduction <add>, %6, %cst_7 [1] : vector<8x256xf32> to vector<8xf32>
    %9 = vector.shape_cast %8 : vector<8xf32> to vector<8x1xf32>
    %10 = arith.addf %7, %9 : vector<8x1xf32>
    %c0_8 = arith.constant 0 : index
    %c0_9 = arith.constant 0 : index
    %11 = vector.load %arg8[%c0_8, %c0_9] : memref<8x1xf32, #tpu.memory_space<vmem>>, vector<8x1xf32>
    tpu.vector_store %arg8[%c0_8, %c0_9], %10 {strides = array<i32>} : memref<8x1xf32, #tpu.memory_space<vmem>>, vector<8x1xf32>,
    %c0_10 = arith.constant 0 : index
    %c0_11 = arith.constant 0 : index
    %12 = vector.load %arg9[%c0_10, %c0_11] : memref<8x1xf32, #tpu.memory_space<vmem>>, vector<8x1xf32>
    %13 = arith.mulf %6, %6 : vector<8x256xf32>
    %cst_12 = arith.constant dense<0.000000e+00> : vector<8xf32>
    %14 = vector.multi_reduction <add>, %13, %cst_12 [1] : vector<8x256xf32> to vector<8xf32>
    %15 = vector.shape_cast %14 : vector<8xf32> to vector<8x1xf32>
    %16 = arith.addf %12, %15 : vector<8x1xf32>
    %c0_13 = arith.constant 0 : index
    %c0_14 = arith.constant 0 : index
    %17 = vector.load %arg9[%c0_13, %c0_14] : memref<8x1xf32, #tpu.memory_space<vmem>>, vector<8x1xf32>
    tpu.vector_store %arg9[%c0_13, %c0_14], %16 {strides = array<i32>} : memref<8x1xf32, #tpu.memory_space<vmem>>, vector<8x1xf32>,
    %c0_15 = arith.constant 0 : index
    %18 = arith.index_cast %arg2 : i32 to index
    %c0_16 = arith.constant 0 : index
    %c0_17 = arith.constant 0 : index
    %19 = vector.load %arg7[%c0_15, %18, %c0_16, %c0_17] : memref<1x1x8x256xf32, #tpu.memory_space<vmem>>, vector<1x1x8x256xf32>
    %20 = vector.shape_cast %19 : vector<1x1x8x256xf32> to vector<8x256xf32>
    %21 = vector.shape_cast %6 : vector<8x256xf32> to vector<1x1x8x256xf32>
    tpu.vector_store %arg7[%c0_15, %18, %c0_16, %c0_17], %21 {strides = array<i32>} : memref<1x1x8x256xf32, #tpu.memory_space<vmem>>, vector<1x1x8x256xf32>,
    %c0_i32_18 = arith.constant 0 : i32
    %22 = arith.cmpi eq, %arg2, %c0_i32_18 : i32
    %23 = arith.extui %22 : i1 to i32
    %c0_i32_19 = arith.constant 0 : i32
    %24 = arith.cmpi ne, %23, %c0_i32_19 : i32
    scf.if %24 {
      %c0_20 = arith.constant 0 : index
      %c0_21 = arith.constant 0 : index
      %25 = vector.load %arg8[%c0_20, %c0_21] : memref<8x1xf32, #tpu.memory_space<vmem>>, vector<8x1xf32>
      %cst_22 = arith.constant 3.906250e-03 : f32
      %26 = vector.broadcast %cst_22 : f32 to vector<8x1xf32>
      %27 = arith.mulf %25, %26 : vector<8x1xf32>
      %c0_23 = arith.constant 0 : index
      %c0_24 = arith.constant 0 : index
      %28 = vector.load %arg9[%c0_23, %c0_24] : memref<8x1xf32, #tpu.memory_space<vmem>>, vector<8x1xf32>
      %cst_25 = arith.constant 3.906250e-03 : f32
      %29 = vector.broadcast %cst_25 : f32 to vector<8x1xf32>
      %30 = arith.mulf %28, %29 : vector<8x1xf32>
      %31 = arith.mulf %27, %27 : vector<8x1xf32>
      %32 = arith.subf %30, %31 : vector<8x1xf32>
      %cst_26 = arith.constant 0.000000e+00 : f32
      %33 = vector.broadcast %cst_26 : f32 to vector<8x1xf32>
      %34 = arith.maximumf %32, %33 : vector<8x1xf32>
      %cst_27 = arith.constant 9.99999974E-6 : f32
      %35 = vector.broadcast %cst_27 : f32 to vector<8x1xf32>
      %36 = arith.addf %34, %35 : vector<8x1xf32>
      %37 = math.rsqrt %36 : vector<8x1xf32>
      %c0_28 = arith.constant 0 : index
      %c0_29 = arith.constant 0 : index
      %38 = vector.load %arg5[%c0_28, %c0_29] : memref<8x1xf32, #tpu.memory_space<vmem>>, vector<8x1xf32>
      %39 = arith.mulf %37, %38 : vector<8x1xf32>
      %c0_30 = arith.constant 0 : index
      %c0_31 = arith.constant 0 : index
      %40 = vector.load %arg6[%c0_30, %c0_31] : memref<8x1xf32, #tpu.memory_space<vmem>>, vector<8x1xf32>
      %41 = arith.mulf %27, %39 : vector<8x1xf32>
      %42 = arith.subf %40, %41 : vector<8x1xf32>
      %c0_32 = arith.constant 0 : index
      %c0_33 = arith.constant 0 : index
      %c0_34 = arith.constant 0 : index
      %c0_35 = arith.constant 0 : index
      %43 = vector.load %arg7[%c0_32, %c0_33, %c0_34, %c0_35] : memref<1x1x8x256xf32, #tpu.memory_space<vmem>>, vector<1x1x8x256xf32>
      %44 = vector.shape_cast %43 : vector<1x1x8x256xf32> to vector<8x256xf32>
      %45 = vector.broadcast %39 : vector<8x1xf32> to vector<8x256xf32>
      %46 = arith.mulf %44, %45 : vector<8x256xf32>
      %47 = vector.broadcast %42 : vector<8x1xf32> to vector<8x256xf32>
      %48 = arith.addf %46, %47 : vector<8x256xf32>
      %cst_36 = arith.constant 0.000000e+00 : f32
      %49 = vector.broadcast %cst_36 : f32 to vector<8x256xf32>
      %50 = arith.maximumf %48, %49 : vector<8x256xf32>
      %c0_37 = arith.constant 0 : index
      %c0_38 = arith.constant 0 : index
      %c0_39 = arith.constant 0 : index
      %c0_40 = arith.constant 0 : index
      %51 = vector.load %arg7[%c0_37, %c0_38, %c0_39, %c0_40] : memref<1x1x8x256xf32, #tpu.memory_space<vmem>>, vector<1x1x8x256xf32>
      %52 = vector.shape_cast %51 : vector<1x1x8x256xf32> to vector<8x256xf32>
      %53 = vector.shape_cast %50 : vector<8x256xf32> to vector<1x1x8x256xf32>
      tpu.vector_store %arg7[%c0_37, %c0_38, %c0_39, %c0_40], %53 {strides = array<i32>} : memref<1x1x8x256xf32, #tpu.memory_space<vmem>>, vector<1x1x8x256xf32>,
    } else {
    }
    return
  }
  func.func @transform_0(%arg0: i32, %arg1: i32, %arg2: i32) -> (i32, i32, i32) {
    %c0_i32 = arith.constant 0 : i32
    %c0_i32_0 = arith.constant 0 : i32
    return %arg0, %c0_i32, %arg2 : i32, i32, i32
  }
  func.func @transform_1(%arg0: i32, %arg1: i32, %arg2: i32) -> (i32, i32) {
    %c0_i32 = arith.constant 0 : i32
    %c0_i32_0 = arith.constant 0 : i32
    return %arg1, %c0_i32 : i32, i32
  }
  func.func @transform_2(%arg0: i32, %arg1: i32, %arg2: i32) -> (i32, i32) {
    %c0_i32 = arith.constant 0 : i32
    %c0_i32_0 = arith.constant 0 : i32
    return %arg1, %c0_i32 : i32, i32
  }
  func.func @transform_3(%arg0: i32, %arg1: i32, %arg2: i32) -> (i32, i32) {
    %c0_i32 = arith.constant 0 : i32
    %c0_i32_0 = arith.constant 0 : i32
    return %arg1, %c0_i32 : i32, i32
  }
  func.func @transform_4(%arg0: i32, %arg1: i32, %arg2: i32) -> (i32, i32, i32, i32) {
    %c0_i32 = arith.constant 0 : i32
    %c0_i32_0 = arith.constant 0 : i32
    %c0_i32_1 = arith.constant 0 : i32
    return %arg0, %c0_i32, %arg1, %c0_i32_0 : i32, i32, i32, i32
  }
}

</mosaic_0001>

<bundles_post_ra>
// kernel: tpu_custom_call.1
= control target key start
LH: loop header
LB: loop body
LE: loop exit
PB: predicated region body
PF: predicated region fallthrough
CT: control target
= control target key end

     0   :  { %9 = vsyncpa [#allocation5], 0  ;;  %s902_s0 = inlined_call_operand.vmem [shape: bf16[2,36,256], index: 0, kind: input, shape index: {}]   ;;  %s903_s1 = inlined_call_operand.vmem [shape: bf16[8,36], index: 1, kind: input, shape index: {}]   ;;  %s904_s2 = inlined_call_operand.vmem [shape: f32[8,1], index: 2, kind: input, shape index: {}]   ;;  %s905_s3 = inlined_call_operand.vmem [shape: f32[8,1], index: 3, kind: input, shape index: {}]   ;;  %s906_s4 = inlined_call_operand.hbm [shape: f32[2,1,8,256], index: 4, kind: output, shape index: {}]  }
   0x1   :  { %11 = vsyncpa [#allocation5 + $0x1], 0  ;;  %s777_s15 = smov 0   ;;  %s779_s16 = smov 0  }
   0x2   :  { %s781_s17 = smov 0   ;;  %s783_s18 = smov 0  }
   0x3   :  { %s785_s19 = smov 0   ;;  %s787_s20 = smov 0  }
   0x4 LB: > { %s575_s21 = sadd.s32 4294967295, %s747_s20   ;;  %s576_s22 = sadd.s32 4294967294, %s747_s20   ;;  %s747_s20 = sphi %s787_s20, %s17_s20   ;;  %s743_s19 = sphi %s785_s19, %s913_s19   ;;  %s739_s18 = sphi %s783_s18, %s912_s18   ;;  %s735_s17 = sphi %s781_s17, %s911_s17   ;;  %s731_s16 = sphi %s779_s16, %s910_s16   ;;  %s727_s15 = sphi %s777_s15, %s909_s15  }
   0x5   : > { %s36_s23 = sadd.s32 1, %s743_s19  ;;  %s151_s24 = sadd.s32 1, %s735_s17 }
   0x6   : > { %p38_p0 = scmp.ge.s32.totalorder %s36_s23, 2  ;;  %p161_p1 = scmp.ne.s32.totalorder %s735_s17, %s731_s16 }
   0x7   : > { %p162_p2 = scmp.eq.s32.totalorder %s575_s21, 1  ;;  %p167_p3 = scmp.ne.s32.totalorder %s731_s16, %s727_s15 }
   0x8   : > { %s915_s23 = smov (%p38_p0, %s36_s23), 0  ;;  %p168_p5 = scmp.eq.s32.totalorder %s576_s22, 1 }
   0x9   : > { %p817_p4 = por %p162_p2, %p161_p1  ;;  %s146_s26 = ssub.s32 %s743_s19, %s915_s23 }
   0xa   : > { %p582_p6 = scmp.ge.s32.totalorder %s747_s20, 1  ;;  %p149_p7 = scmp.eq.s32.totalorder %s146_s26, 0 }
   0xb   : > { %p824_p8 = por %p168_p5, %p167_p3  ;;  %p220_p9 = scmp.lt.s32.totalorder %s747_s20, 3 }
   0xc   : > { %s830_s28 = scalar_select %p149_p7, %s735_s17, %s151_s24  }
   0xd   : > { %p221_p10 = pnand %p582_p6, %p220_p9 }
   0xe   : > { %p263_p11 = scmp.lt.s32.totalorder (!%p221_p10), %s739_s18, 1  ;;  %v749_v0 = vmov (!%p221_p10), 0   ;;  %vm327_vm0 = vcmask (!%p221_p10), 1041408   ;;  %v292_v9 = vld [vmem:[%s903_s1] sm:$0xf] (!%p221_p10)  ;;  %vm323_vm1 = vcmask (!%p221_p10), 293888  }
   0xf   : > { %224 = sbr.rel (%p221_p10) target bundleno = 582 (0x246), region = 36  ;;  %366 = vmatprep.mubr.bf16.mxu0 (!%p221_p10), %v749_v0  ;;  %657 = vset.pattern.permute.xlu1 (!%p221_p10), %v749_v0  ;;  %vm289_vm2 = vcmask (!%p221_p10), 7168   ;;  %v750_v10 = vmov (!%p221_p10), 0.0   ;;  %v407_v33 = vld [vmem:[%s904_s2] sm:$0xff] (!%p221_p10)  ;;  %s259_s14 = sand.u32 (!%p221_p10), 1, %s731_s16  }
  0x10   : > { %658 = vset.pattern.permute.xlu0 (!%p221_p10), %v749_v0  ;;  %290 = vst.msk [vmem:[#allocation2] sm:$0xff] (!%p221_p10), %vm289_vm2, %v750_v10  ;;  %291 = vst.msk [vmem:[#allocation3] sm:$0xff] (!%p221_p10), %vm289_vm2, %v750_v10  ;;  %v409_v36 = vld [vmem:[%s905_s3] sm:$0xff] (!%p221_p10)  ;;  %s583_s21 = sshll.u32 (!%p221_p10), %s259_s14, 4  ;;  %s598_s22 = sshll.u32 (!%p221_p10), %s739_s18, 8 }
  0x11   : > { %s261_s24 = scalar_lea.vmem (!%p221_p10), [#allocation4], %s583_s21  ;;  %s855_s5 = scalar_lea.hbm (!%p221_p10), %s906_s4, %s598_s22 }
  0x12   : > { %s449_s26 = sshll.u32 (!%p221_p10), %s261_s24, 4  ;;  %s433_s6 = scalar_lea.sflag (!%p221_p10), [#allocation5], %s259_s14  ;;  %s857_s26 = int_to_ptr.vmem [resolvable:$true] %s449_s26 }
  0x16   : > { %s264_s29 = scalar_select %p263_p11, %s739_s18, 1 }
  0x17   : > { %v375_v19 = vld [vmem:[#allocation2] sm:$0xff]  ;;  %v382_v22 = vld [vmem:[#allocation3] sm:$0xff]  ;;  %s669_s18 = scalar_lea.vmem %s857_s26, 256 }
  0x18   : > { %s599_s30 = smul.u32 40, %s264_s29  ;;  %p670_p12 = scmp.ne.s32.totalorder %s857_s26, %s669_s18 }
  0x1a   : > { %s270_s7 = scalar_lea.vmem %s902_s0, %s599_s30  ;;  %p671_p13 = pnand %p670_p12, %p817_p4 }
  0x1b   : > { %v659_v1 = vld [vmem:[%s270_s7 + $0x4] ss:$8 sps:$4 sm:$0xff]   ;;  %v661_v2 = vld [vmem:[%s270_s7] ss:$8 sps:$4 sm:$0xff]   ;;  %v662_v3 = vld [vmem:[%s270_s7 + $0x14] ss:$8 sps:$4 sm:$0xff]  }
  0x1c   : > { %334 = vmatprep.subr.bf16.mxu0 %v659_v1  ;;  %v297_v4 = vld [vmem:[%s270_s7 + $0x20] sm:$0x33]  ;;  %v664_v5 = vld [vmem:[%s270_s7 + $0x10] ss:$8 sps:$4 sm:$0xff]   ;;  %p672_p0 = pneg %p671_p13  ;;  %s751_s7 = smov [#allocation4]  }
  0x1d   : > { %335 = vmatpush1.bf16.msra.mxu0 %v661_v2  ;;  %v590_v6 = vcombine.high %v297_v4, %v297_v4  ;;  %v589_v7 = vcombine.low %v297_v4, %v297_v4  ;;  %s673_s8 = sshll.u32 %s751_s7, 4  ;;  %s674_s8 = int_to_ptr.vmem [resolvable:$false] %s673_s8 }
  0x1e   : > { %336 = vmatprep.subr.bf16.mxu0 %v662_v3  ;;  %s675_s9 = scalar_lea.vmem %s674_s8, 512  ;;  %p676_p1 = scmp.lt.s32.totalorder %s857_s26, %s674_s8 }
  0x1f   : > { %v329_v8 = vsel %vm327_vm0, %v589_v7, 0  ;;  %p677_p2 = scmp.lt.s32.totalorder %s675_s9, %s669_s18 }
  0x21   : > { %337 = vmatpush1.bf16.msra.mxu0 %v664_v5  ;;  %p678_p3 = por %p677_p2, %p676_p1 }
  0x22   : > { %591 = vmatprep.subr.msk.bf16.mxu0 %vm327_vm0, %v590_v6 }
  0x23   : > { %p679_p5 = pnand %p678_p3, %p672_p0 }
  0x25   : > { %339 = vmatpush1.bf16.msra.mxu0 %v329_v8 }
  0x28   : > { %592 = vmatmul.mubr.msk.bf16.vlgmr.msra.gmra.mrb[0].mxu0 %vm323_vm1, %v292_v9 }
  0xfb   : > { %v368_v11 = vpop.f32.mrb[0].mxu0 }
  0xfc   : > { %v370_v12 = vpop.f32.mrb[1].mxu0  ;;  %v383_v13 = vmul.f32 %v368_v11, %v368_v11 }
  0xfd   : > { %v372_v14 = vpop.f32.mrb[2].mxu0  ;;  %v376_v15 = vadd.f32 %v370_v12, %v368_v11  ;;  %v384_v16 = vmul.f32 %v370_v12, %v370_v12 }
  0xfe   : > { %v373_v17 = vpop.f32.mrb[3].mxu0 }
  0xff   : > { %377 = vadd.xlane.f32.xlu0 %v376_v15  ;;  %v385_v18 = vadd.f32 %v384_v16, %v383_v13 }
 0x103   : > { %386 = vadd.xlane.f32.xlu0 %v385_v18 }
 0x18c   : > { %v378_v20 = vpop.xlane.xlu0 %377 }
 0x18d   : > { %v379_v21 = vadd.f32 %v378_v20, %v375_v19 }
 0x18f   : > { %381 = vst.msk [vmem:[#allocation2] sm:$0xff] %vm289_vm2, %v379_v21 }
 0x190   : > { %v387_v23 = vpop.xlane.xlu0 %386 }
 0x191   : > { %v388_v24 = vadd.f32 %v387_v23, %v382_v22 }
 0x193   : > { %389 = vst.msk [vmem:[#allocation3] sm:$0xff] %vm289_vm2, %v388_v24 }
 0x196   : > { %v398_v25 = vld [vmem:[#allocation2] sm:$0xff] }
 0x197   : > { %v399_v26 = vmul.f32 0.00390625, %v398_v25 }
 0x199   : > { %v402_v29 = vmul.f32 %v399_v26, %v399_v26 }
 0x19a   : > { %v400_v27 = vld [vmem:[#allocation3] sm:$0xff] }
 0x19b   : > { %v401_v28 = vmul.f32 0.00390625, %v400_v27 }
 0x19d   : > { %v403_v30 = vsub.f32 %v401_v28, %v402_v29 }
 0x19f   : > { %v404_v31 = vmax.f32 %v403_v30, 0.0 }
 0x1a1   : > { %v405_v32 = vadd.f32 1e-05, %v404_v31 }
 0x1a3   : > { %667 = vrsqrt.f32 %v405_v32 }
 0x1ad   : > { %v668_v34 = vpop.eup %667 }
 0x1ae   : > { %v408_v35 = vmul.f32 %v668_v34, %v407_v33 }
 0x1b0   : > { %416 = vperm.xlu1 %657, %v408_v35   ;;  %v410_v37 = vmul.f32 %v408_v35, %v399_v26 }
 0x1b2   : > { %v411_v38 = vsub.f32 %v409_v36, %v410_v37 }
 0x1b4   : > { %423 = vperm.xlu1 %657, %v411_v38  }
 0x22f   : > { %v417_v39 = vpop.permute.xlu1 %416 }
 0x230   : > { %v419_v40 = vmul.f32 %v417_v39, %v368_v11  ;;  %v420_v41 = vmul.f32 %v417_v39, %v370_v12 }
 0x233   : > { %v424_v42 = vpop.permute.xlu1 %423 }
 0x234   : > { %v426_v43 = vadd.f32 %v424_v42, %v419_v40  ;;  %v427_v44 = vadd.f32 %v424_v42, %v420_v41 }
 0x236   : > { %v428_v45 = vmax.f32 %v426_v43, 0.0  ;;  %v429_v46 = vmax.f32 %v427_v44, 0.0 }
 0x238   : > { %430 = vst [vmem:[%s261_s24] sm:$0xff] %v428_v45  ;;  %431 = vst [vmem:[%s261_s24 + $0x8] sm:$0xff] %v429_v46 }
 0x239   : > { %682 = shalt.err (!%p679_p5)
}
 0x23a   : > { %s683_s10 = scalar_lea.hbm %s855_s5, 256  ;;  %s687_s13 = scalar_lea.hbm %s906_s4, 512 }
 0x23b   : > { %p684_p6 = scmp.ne.s32.totalorder %s855_s5, %s683_s10  ;;  %p688_p10 = scmp.lt.u32.totalorder %s855_s5, %s906_s4 }
 0x23c   : > { %p689_p11 = scmp.lt.u32.totalorder %s687_s13, %s683_s10  ;;  %p691_p13 = scmp.lt.u32.totalorder %s683_s10, %s855_s5 }
 0x23d   : > { %p685_p7 = pnand %p684_p6, %p817_p4 }
 0x23e   : > { %p690_p12 = por %p689_p11, %p688_p10 }
 0x23f   : > { %p686_p9 = pneg %p685_p7 }
 0x240   : > { %p692_p0 = por %p691_p13, %p690_p12 }
 0x242   : > { %p693_p1 = pnand %p692_p0, %p686_p9 }
 0x244   : > { %696 = shalt.err (!%p693_p1)
}
 0x245   : > { %600 = dma.vmem_to_hbm [thread:$0]  (%p817_p4), %s857_s26, 256, %s855_s5, %s433_s6  }
 0x246 PF: > { %p606_p2 = scmp.ge.s32.totalorder %s747_s20, 2  ;;  %s461_s22 = sand.u32 1, %s727_s15  }
 0x247   : > { %s462_s24 = scalar_lea.sflag [#allocation5], %s461_s22 }
 0x248   : > { %p603_p3 = pnand %p606_p2, %p824_p8 }
 0x24a   : > { %722 = dma.done.wait (!%p603_p3), %s462_s24, 256  }
 0x24b   : > { %724 = vsyncadd (!%p603_p3), %s462_s24, 4294967040  ;;  %s17_s20 = sadd.s32 1, %s747_s20   ;;  %s909_s15 = smov %s731_s16 }
 0x24c   : > { %p14_p5 = scmp.ge.s32.totalorder %s17_s20, 4   ;;  %s910_s16 = smov %s735_s17 }
 0x24d   : > { %s911_s17 = smov %s830_s28  ;;  %s912_s18 = smov %s743_s19 }
 0x24e   : > { %s913_s19 = smov %s915_s23  ;;  %16 = sbr.rel (!%p14_p5) target bundleno = 4 (0x4), region = 89 }
 0x255   :  { %467 = vsyncpa [#allocation5], 1 }
 0x256   :  { %469 = vsyncpa [#allocation5 + $0x1], 1 }

</bundles_post_ra>
